<compile_context>
chip_gen: v7x
topology: tpu7x:2x2x1
jax: 0.10.0
libtpu: 0.0.40
codegen_flags: <defaults>
</compile_context>

<pallas_src>
import jax
import jax.numpy as jnp
from jax import lax
from jax.experimental import pallas as pl
from jax.experimental.pallas import tpu as pltpu


def _make_sum_kernel(h_total: int, th: int, needs_h_mask: bool):
    """Builds a kernel reducing axis 1 of a (TB, TH, W) block into (TB, W)."""

    def kernel(x_ref, o_ref, acc_ref):
        h = pl.program_id(1)

        @pl.when(h == 0)
        def _init():
            acc_ref[...] = jnp.zeros_like(acc_ref)

        x = x_ref[...].astype(acc_ref.dtype)  # (TB, TH, W)
        if needs_h_mask:
            # Last H tile may extend past the real extent; zero the padding
            # so out-of-bounds garbage never enters the accumulator.
            row_ids = h * th + lax.broadcasted_iota(jnp.int32, x.shape, 1)
            x = jnp.where(row_ids < h_total, x, jnp.zeros_like(x))

        acc_ref[...] += jnp.sum(x, axis=1)

        @pl.when(h == pl.num_programs(1) - 1)
        def _store():
            o_ref[...] = acc_ref[...].astype(o_ref.dtype)

    return kernel


def _choose_tiles(bc: int, h: int, w: int, itemsize: int, block_bytes: int):
    """Pick (TB, TH) so the input block is ~block_bytes and BlockSpec tiling
    constraints hold (second-to-last block dims are multiples of 8 or equal
    the full array dim)."""
    row_bytes = h * w * itemsize
    # Everything fits in one block.
    if bc * row_bytes <= block_bytes:
        return bc, h
    # Batch whole (H, W) slabs; at least 8 fit in the budget.
    if 8 * row_bytes <= block_bytes:
        tb = min(bc, block_bytes // row_bytes)
        if tb >= 8:
            tb = (tb // 8) * 8  # sublane-aligned output block
        return tb, h
    # Single rows are large: tile the reduction (H) axis as well.
    tb = bc if bc <= 8 else 8
    th = max(8, (block_bytes // (tb * w * itemsize)) // 8 * 8)
    th = min(th, h)
    return tb, th


def aggregator_forward(x, agg_type: int = 0, *, block_bytes: int = 4 << 20):
    """Pallas implementation of Aggregator(type=0).forward.

    x: (B, C, H, W) array.  Returns (B, C, 1, W) = sum over dim 2, keepdim=True.
    """
    if agg_type != 0:
        # TODO(synk): other aggregator types are not defined in the reference module.
        raise NotImplementedError("Aggregator only implements type=0")

    B, C, H, W = x.shape
    BC = B * C
    x3 = x.reshape(BC, H, W)  # free: NCHW is contiguous over (B, C)

    itemsize = jnp.dtype(x.dtype).itemsize
    acc_dtype = jnp.float32 if jnp.issubdtype(x.dtype, jnp.floating) else jnp.int32

    TB, TH = _choose_tiles(BC, H, W, itemsize, block_bytes)
    grid = (pl.cdiv(BC, TB), pl.cdiv(H, TH))
    needs_h_mask = (H % TH) != 0

    out2 = pl.pallas_call(
        _make_sum_kernel(H, TH, needs_h_mask),
        out_shape=jax.ShapeDtypeStruct((BC, W), x.dtype),
        grid=grid,
        in_specs=[pl.BlockSpec((TB, TH, W), lambda i, h: (i, h, 0))],
        out_specs=pl.BlockSpec((TB, W), lambda i, h: (i, 0)),
        scratch_shapes=[pltpu.VMEM((TB, W), acc_dtype)],
        compiler_params=pltpu.CompilerParams(
            # Leading (flattened B*C) axis shards across TCs on v7x;
            # H axis is a reduction -> "arbitrary".
            dimension_semantics=("parallel", "arbitrary"),
        ),
    )(x3)

    return out2.reshape(B, C, 1, W)


def _reference(x):
    return jnp.sum(x, axis=2, keepdims=True)


if __name__ == "__main__":
    key = jax.random.PRNGKey(0)

    # Primary small NCHW test consistent with the module's forward.
    x = jax.random.normal(key, (2, 4, 16, 16), dtype=jnp.float32)
    out = jax.block_until_ready(aggregator_forward(x, agg_type=0))
    ref = _reference(x)
    assert out.shape == (2, 4, 1, 16), out.shape
    assert jnp.allclose(out, ref, atol=1e-5, rtol=1e-5), "mismatch vs reference"

    # Extra self-checks (tiny shapes, artificially small block budget) that
    # exercise the batched-row tiling, the H-reduction grid axis, and the
    # partial-H masking path.
    k1, k2, k3 = jax.random.split(key, 3)

    x1 = jax.random.normal(k1, (2, 16, 16, 16), dtype=jnp.float32)
    o1 = jax.block_until_ready(aggregator_forward(x1, block_bytes=16 * 1024))
    assert jnp.allclose(o1, _reference(x1), atol=1e-5, rtol=1e-5)

    x2 = jax.random.normal(k2, (2, 4, 24, 16), dtype=jnp.float32)
    o2 = jax.block_until_ready(aggregator_forward(x2, block_bytes=2 * 1024))
    assert jnp.allclose(o2, _reference(x2), atol=1e-5, rtol=1e-5)

    x3 = jax.random.normal(k3, (2, 4, 20, 16), dtype=jnp.float32)  # H % TH != 0
    o3 = jax.block_until_ready(aggregator_forward(x3, block_bytes=2 * 1024))
    assert jnp.allclose(o3, _reference(x3), atol=1e-5, rtol=1e-5)

    # bf16 input: f32 accumulation inside the kernel, cast back to bf16.
    xb = jax.random.normal(key, (2, 4, 16, 16), dtype=jnp.bfloat16)
    ob = jax.block_until_ready(aggregator_forward(xb))
    refb = jnp.sum(xb.astype(jnp.float32), axis=2, keepdims=True).astype(jnp.bfloat16)
    assert jnp.allclose(ob.astype(jnp.float32), refb.astype(jnp.float32),
                        atol=1e-1, rtol=1e-2)

    print("KERNEL_OK")
</pallas_src>

<mosaic_0001>
module attributes {stable_mosaic.version = 11 : i64} {
  func.func @kernel(%arg0: i32, %arg1: i32, %arg2: memref<8x16x16xf32, #tpu.memory_space<vmem>>, %arg3: memref<8x16xf32, #tpu.memory_space<vmem>>, %arg4: memref<8x16xf32, #tpu.memory_space<vmem>>) attributes {dimension_semantics = [#tpu.dimension_semantics<parallel>, #tpu.dimension_semantics<arbitrary>], iteration_bounds = array<i64: 1, 1>, scalar_prefetch = 0 : i64, scratch_operands = 1 : i64, tpu.core_type = #tpu.core_type<tc>, window_params = [{transform_indices = @transform_0, window_bounds = array<i64: 8, 16, 16>}, {transform_indices = @transform_1, window_bounds = array<i64: 8, 16>}]} {
    %c0_i32 = arith.constant 0 : i32
    %0 = arith.cmpi eq, %arg1, %c0_i32 : i32
    %1 = arith.extui %0 : i1 to i32
    %c0_i32_0 = arith.constant 0 : i32
    %2 = arith.cmpi ne, %1, %c0_i32_0 : i32
    scf.if %2 {
      %cst_9 = arith.constant 0.000000e+00 : f32
      %11 = vector.broadcast %cst_9 : f32 to vector<8x16xf32>
      %c0_10 = arith.constant 0 : index
      %c0_11 = arith.constant 0 : index
      %12 = vector.load %arg4[%c0_10, %c0_11] : memref<8x16xf32, #tpu.memory_space<vmem>>, vector<8x16xf32>
      tpu.vector_store %arg4[%c0_10, %c0_11], %11 {strides = array<i32>} : memref<8x16xf32, #tpu.memory_space<vmem>>, vector<8x16xf32>,
    } else {
    }
    %c0 = arith.constant 0 : index
    %c0_1 = arith.constant 0 : index
    %c0_2 = arith.constant 0 : index
    %3 = vector.load %arg2[%c0, %c0_1, %c0_2] : memref<8x16x16xf32, #tpu.memory_space<vmem>>, vector<8x16x16xf32>
    %c0_3 = arith.constant 0 : index
    %c0_4 = arith.constant 0 : index
    %4 = vector.load %arg4[%c0_3, %c0_4] : memref<8x16xf32, #tpu.memory_space<vmem>>, vector<8x16xf32>
    %cst = arith.constant dense<0.000000e+00> : vector<8x16xf32>
    %5 = vector.multi_reduction <add>, %3, %cst [1] : vector<8x16x16xf32> to vector<8x16xf32>
    %6 = arith.addf %4, %5 : vector<8x16xf32>
    %c0_5 = arith.constant 0 : index
    %c0_6 = arith.constant 0 : index
    %7 = vector.load %arg4[%c0_5, %c0_6] : memref<8x16xf32, #tpu.memory_space<vmem>>, vector<8x16xf32>
    tpu.vector_store %arg4[%c0_5, %c0_6], %6 {strides = array<i32>} : memref<8x16xf32, #tpu.memory_space<vmem>>, vector<8x16xf32>,
    %c0_i32_7 = arith.constant 0 : i32
    %8 = arith.cmpi eq, %arg1, %c0_i32_7 : i32
    %9 = arith.extui %8 : i1 to i32
    %c0_i32_8 = arith.constant 0 : i32
    %10 = arith.cmpi ne, %9, %c0_i32_8 : i32
    scf.if %10 {
      %c0_9 = arith.constant 0 : index
      %c0_10 = arith.constant 0 : index
      %11 = vector.load %arg4[%c0_9, %c0_10] : memref<8x16xf32, #tpu.memory_space<vmem>>, vector<8x16xf32>
      %c0_11 = arith.constant 0 : index
      %c0_12 = arith.constant 0 : index
      %12 = vector.load %arg3[%c0_11, %c0_12] : memref<8x16xf32, #tpu.memory_space<vmem>>, vector<8x16xf32>
      tpu.vector_store %arg3[%c0_11, %c0_12], %11 {strides = array<i32>} : memref<8x16xf32, #tpu.memory_space<vmem>>, vector<8x16xf32>,
    } else {
    }
    return
  }
  func.func @transform_0(%arg0: i32, %arg1: i32) -> (i32, i32, i32) {
    %c0_i32 = arith.constant 0 : i32
    %c0_i32_0 = arith.constant 0 : i32
    return %arg0, %arg1, %c0_i32 : i32, i32, i32
  }
  func.func @transform_1(%arg0: i32, %arg1: i32) -> (i32, i32) {
    %c0_i32 = arith.constant 0 : i32
    %c0_i32_0 = arith.constant 0 : i32
    return %arg0, %c0_i32 : i32, i32
  }
}

</mosaic_0001>

<bundles_post_ra>
// kernel: tpu_custom_call.1
= control target key start
LH: loop header
LB: loop body
LE: loop exit
PB: predicated region body
PF: predicated region fallthrough
CT: control target
= control target key end

     0   :  { %6 = vsyncpa [#allocation4], 0  ;;  %s277_s0 = inlined_call_operand.hbm [shape: f32[8,16,16], index: 0, kind: input, shape index: {}]   ;;  %s278_s1 = inlined_call_operand.hbm [shape: f32[8,16], index: 1, kind: output, shape index: {}]  }
   0x1   :  { %7 = vsyncpa [#allocation5], 0  ;;  %s217_s6 = smov [#allocation3]   ;;  %s169_s10 = scalar_lea.hbm %s277_s0, 2048 }
   0x2   :  { %s13_s7 = sshll.u32 %s217_s6, 4  ;;  %p170_p0 = scmp.ne.s32.totalorder %s277_s0, %s169_s10  ;;  %s14_s7 = int_to_ptr.vmem [resolvable:$true] %s13_s7 }
   0x3   :  { %p173_p1 = scmp.lt.u32.totalorder %s169_s10, %s277_s0 }
   0x5   :  { %p175_p2 = pnand %p173_p1, %p170_p0 }
   0x7   :  { %178 = shalt.err (!%p175_p2)
}
   0x8   :  { %s179_s15 = scalar_lea.vmem %s14_s7, 2048  ;;  %p184_p4 = scmp.lt.s32.totalorder %s14_s7, %s14_s7 }
   0x9   :  { %p180_p3 = scmp.ne.s32.totalorder %s14_s7, %s179_s15  ;;  %p185_p5 = scmp.lt.s32.totalorder %s179_s15, %s179_s15 }
   0xb   :  { %p186_p6 = por %p185_p5, %p184_p4 }
   0xd   :  { %p187_p7 = pnand %p186_p6, %p180_p3 }
   0xf   :  { %190 = shalt.err (!%p187_p7)
}
  0x10   :  { %s218_s16 = smov 128   ;;  %s219_s17 = smov 8  }
  0x11   :  { %19 = dma.hbm_to_vmem [thread:$0]  %s277_s0, 2048, %s14_s7, [#allocation4], %s218_s16, %s218_s16, %s219_s17  }
  0x12   :  { %213 = dma.done.wait [#allocation4], 2048  }
  0x13   :  { %214 = vsyncadd [#allocation4], 4294965248  ;;  %vm27_vm0 = vcmask 130048   ;;  %v220_v0 = vmov 0.0   ;;  %v29_v1 = vld [vmem:[#allocation3] sm:$0xff]  ;;  %v30_v2 = vld [vmem:[#allocation3 + $0x8] sm:$0xff] }
  0x14   :  { %28 = vst.msk [vmem:[#allocation2] sm:$0xff] %vm27_vm0, %v220_v0  ;;  %v31_v3 = vld [vmem:[#allocation3 + $0x10] sm:$0xff]  ;;  %v32_v4 = vld [vmem:[#allocation3 + $0x18] sm:$0xff]  ;;  %v33_v5 = vld [vmem:[#allocation3 + $0x20] sm:$0xff]  ;;  %v47_v7 = vsel %vm27_vm0, %v29_v1, 0.0  ;;  %v48_v8 = vsel %vm27_vm0, %v30_v2, 0.0 }
  0x15   :  { %v34_v6 = vld [vmem:[#allocation3 + $0x28] sm:$0xff]  ;;  %v56_v9 = vsel %vm27_vm0, %v31_v3, 0.0  ;;  %v35_v10 = vld [vmem:[#allocation3 + $0x30] sm:$0xff]  ;;  %v36_v11 = vld [vmem:[#allocation3 + $0x38] sm:$0xff]  ;;  %v49_v13 = vadd.f32 %v48_v8, %v47_v7  ;;  %v57_v14 = vsel %vm27_vm0, %v32_v4, 0.0  ;;  %v65_v15 = vsel %vm27_vm0, %v33_v5, 0.0 }
  0x16   :  { %v37_v12 = vld [vmem:[#allocation3 + $0x40] sm:$0xff]  ;;  %v66_v16 = vsel %vm27_vm0, %v34_v6, 0.0  ;;  %v38_v17 = vld [vmem:[#allocation3 + $0x48] sm:$0xff]  ;;  %v39_v18 = vld [vmem:[#allocation3 + $0x50] sm:$0xff]  ;;  %v58_v20 = vadd.f32 %v57_v14, %v56_v9  ;;  %v74_v22 = vsel %vm27_vm0, %v35_v10, 0.0  ;;  %v75_v23 = vsel %vm27_vm0, %v36_v11, 0.0 }
  0x17   :  { %v40_v19 = vld [vmem:[#allocation3 + $0x58] sm:$0xff]  ;;  %v67_v21 = vadd.f32 %v66_v16, %v65_v15  ;;  %v41_v24 = vld [vmem:[#allocation3 + $0x60] sm:$0xff]  ;;  %v50_v25 = vrot.slane %v49_v13, 4  ;;  %v76_v26 = vadd.f32 %v75_v23, %v74_v22  ;;  %v83_v27 = vsel %vm27_vm0, %v37_v12, 0.0  ;;  %v42_v29 = vld [vmem:[#allocation3 + $0x68] sm:$0xff]  ;;  %s221_s0 = smov [#allocation6]  }
  0x18   :  { %v84_v28 = vsel %vm27_vm0, %v38_v17, 0.0  ;;  %v43_v30 = vld [vmem:[#allocation3 + $0x70] sm:$0xff]  ;;  %v59_v31 = vrot.slane %v58_v20, 4  ;;  %v92_v34 = vsel %vm27_vm0, %v39_v18, 0.0  ;;  %v93_v37 = vsel %vm27_vm0, %v40_v19, 0.0  ;;  %v44_v39 = vld [vmem:[#allocation3 + $0x78] sm:$0xff] }
  0x19   :  { %v68_v32 = vrot.slane %v67_v21, 4  ;;  %v85_v33 = vadd.f32 %v84_v28, %v83_v27  ;;  %v51_v35 = vadd.f32 %v50_v25, %v49_v13  ;;  %v77_v36 = vrot.slane %v76_v26, 4  ;;  %s155_s20 = sshll.u32 %s221_s0, 4  ;;  %s156_s20 = int_to_ptr.vmem [resolvable:$true] %s155_s20 }
  0x1a   :  { %v101_v38 = vsel %vm27_vm0, %v41_v24, 0.0  ;;  %vm127_vm1 = vcmask 1041409   ;;  %v60_v40 = vadd.f32 %v59_v31, %v58_v20  ;;  %v94_v43 = vadd.f32 %v93_v37, %v92_v34  ;;  %s191_s21 = scalar_lea.vmem %s156_s20, 128  ;;  %p196_p9 = scmp.lt.s32.totalorder %s156_s20, %s156_s20 }
  0x1b   :  { %v69_v41 = vadd.f32 %v68_v32, %v67_v21  ;;  %v86_v42 = vrot.slane %v85_v33, 4  ;;  %vm129_vm2 = vcmask 1042434   ;;  %v52_v44 = vrot.slane %v51_v35, 2  ;;  %p192_p8 = scmp.ne.s32.totalorder %s156_s20, %s191_s21  ;;  %p197_p10 = scmp.lt.s32.totalorder %s191_s21, %s191_s21 }
  0x1c   :  { %v78_v45 = vadd.f32 %v77_v36, %v76_v26  ;;  %v102_v46 = vsel %vm27_vm0, %v42_v29, 0.0  ;;  %v110_v47 = vsel %vm27_vm0, %v43_v30, 0.0  ;;  %v61_v48 = vrot.slane %v60_v40, 2  ;;  %v45_v29 = vld [vmem:[#allocation2] sm:$0xff] }
  0x1d   :  { %v70_v49 = vrot.slane %v69_v41, 2  ;;  %v87_v50 = vadd.f32 %v86_v42, %v85_v33  ;;  %v95_v51 = vrot.slane %v94_v43, 4  ;;  %v53_v52 = vadd.f32 %v52_v44, %v51_v35  ;;  %p198_p11 = por %p197_p10, %p196_p9 }
  0x1e   :  { %v79_v53 = vrot.slane %v78_v45, 2  ;;  %v103_v54 = vadd.f32 %v102_v46, %v101_v38  ;;  %v111_v55 = vsel %vm27_vm0, %v44_v39, 0.0  ;;  %v62_v56 = vadd.f32 %v61_v48, %v60_v40 }
  0x1f   :  { %v71_v57 = vadd.f32 %v70_v49, %v69_v41  ;;  %v88_v58 = vrot.slane %v87_v50, 2  ;;  %v96_v59 = vadd.f32 %v95_v51, %v94_v43  ;;  %v54_v60 = vrot.slane %v53_v52, 1  ;;  %p199_p12 = pnand %p198_p11, %p192_p8 }
  0x20   :  { %v80_v61 = vadd.f32 %v79_v53, %v78_v45  ;;  %v104_v62 = vrot.slane %v103_v54, 4  ;;  %v112_v63 = vadd.f32 %v111_v55, %v110_v47  ;;  %v63_v0 = vrot.slane %v62_v56, 1 }
  0x21   :  { %v72_v1 = vrot.slane %v71_v57, 1  ;;  %v89_v2 = vadd.f32 %v88_v58, %v87_v50  ;;  %v97_v3 = vrot.slane %v96_v59, 2  ;;  %v55_v4 = vadd.f32 %v54_v60, %v53_v52 }
  0x22   :  { %v81_v5 = vrot.slane %v80_v61, 1  ;;  %v105_v6 = vadd.f32 %v104_v62, %v103_v54  ;;  %v113_v7 = vrot.slane %v112_v63, 4  ;;  %v64_v8 = vadd.f32 %v63_v0, %v62_v56 }
  0x23   :  { %v73_v9 = vadd.f32 %v72_v1, %v71_v57  ;;  %v90_v10 = vrot.slane %v89_v2, 1  ;;  %v98_v11 = vadd.f32 %v97_v3, %v96_v59  ;;  %vm131_vm3 = vcmask 1043459  }
  0x24   :  { %v82_v12 = vadd.f32 %v81_v5, %v80_v61  ;;  %v106_v13 = vrot.slane %v105_v6, 2  ;;  %v114_v14 = vadd.f32 %v113_v7, %v112_v63  ;;  %v128_v17 = vsel %vm127_vm1, %v64_v8, %v55_v4 }
  0x25   :  { %v91_v15 = vadd.f32 %v90_v10, %v89_v2  ;;  %v99_v16 = vrot.slane %v98_v11, 1  ;;  %vm133_vm4 = vcmask 1044484   ;;  %v130_v20 = vsel %vm129_vm2, %v73_v9, %v128_v17 }
  0x26   :  { %v107_v18 = vadd.f32 %v106_v13, %v105_v6  ;;  %v115_v19 = vrot.slane %v114_v14, 2  ;;  %vm135_vm5 = vcmask 1045509   ;;  %v132_v22 = vsel %vm131_vm3, %v82_v12, %v130_v20 }
  0x27   :  { %v100_v21 = vadd.f32 %v99_v16, %v98_v11  ;;  %v134_v25 = vsel %vm133_vm4, %v91_v15, %v132_v22  ;;  %vm137_vm6 = vcmask 1046534   ;;  %vm139_vm7 = vcmask 1047559  }
  0x28   :  { %v108_v23 = vrot.slane %v107_v18, 1  ;;  %v116_v24 = vadd.f32 %v115_v19, %v114_v14 }
  0x29   :  { %v136_v26 = vsel %vm135_vm5, %v100_v21, %v134_v25 }
  0x2a   :  { %v109_v27 = vadd.f32 %v108_v23, %v107_v18  ;;  %v117_v28 = vrot.slane %v116_v24, 1 }
  0x2c   :  { %v118_v30 = vadd.f32 %v117_v28, %v116_v24  ;;  %v138_v31 = vsel %vm137_vm6, %v109_v27, %v136_v26 }
  0x2e   :  { %v140_v32 = vsel %vm139_vm7, %v118_v30, %v138_v31 }
  0x2f   :  { %v142_v33 = vadd.f32 %v140_v32, %v45_v29 }
  0x31   :  { %143 = vst.msk [vmem:[#allocation2] sm:$0xff] %vm27_vm0, %v142_v33 }
  0x38   :  { %v147_v34 = vld [vmem:[#allocation2] sm:$0xff] }
  0x39   :  { %148 = vst.msk [vmem:[#allocation6] sm:$0xff] %vm27_vm0, %v147_v34 }
  0x3a   :  { %202 = shalt.err (!%p199_p12)
}
  0x3b   :  { %s203_s24 = scalar_lea.hbm %s278_s1, 128 }
  0x3c   :  { %p204_p13 = scmp.ne.s32.totalorder %s278_s1, %s203_s24  ;;  %p207_p0 = scmp.lt.u32.totalorder %s203_s24, %s278_s1 }
  0x3e   :  { %p209_p1 = pnand %p207_p0, %p204_p13 }
  0x40   :  { %212 = shalt.err (!%p209_p1)
}
  0x41   :  { %158 = dma.vmem_to_hbm [thread:$0]  %s156_s20, 128, %s278_s1, [#allocation5]  }
  0x42   :  { %215 = dma.done.wait [#allocation5], 128  }
  0x43   :  { %216 = vsyncadd [#allocation5], 4294967168 }
  0x44   :  { %162 = vsyncpa [#allocation4], 1 }
  0x45   :  { %163 = vsyncpa [#allocation5], 1 }

</bundles_post_ra>
